<compile_context>
chip_gen: v5e
topology: v5e:2x2
jax: 0.10.0
libtpu: 0.0.40
codegen_flags: <defaults>
</compile_context>

<pallas_src>
import jax
import jax.numpy as jnp
from jax.experimental import pallas as pl
from jax.experimental.pallas import tpu as pltpu


def _make_outconv_kernel(c_in, c_out, use_mxu):
    def kernel(x_ref, w_ref, b_ref, o_ref):
        # x_ref: (1, C_in, TM)   w_ref: (C_out, C_in)
        # b_ref: (C_out, 1)      o_ref: (1, C_out, TM)
        x = x_ref[0]            # (C_in, TM)
        w = w_ref[...]          # (C_out, C_in)
        b = b_ref[...]          # (C_out, 1)
        if use_mxu:
            acc = jnp.dot(w, x, preferred_element_type=jnp.float32)
        else:
            # Tiny K/N: a 128x128 / 256x256 MXU would be nearly idle, so do the
            # contraction as unrolled VPU broadcast-FMAs over full-width lanes.
            acc = w[:, 0:1] * x[0:1, :]
            for ci in range(1, c_in):
                acc = acc + w[:, ci:ci + 1] * x[ci:ci + 1, :]
            acc = acc.astype(jnp.float32)
        o_ref[0] = (acc + b).astype(o_ref.dtype)

    return kernel


def outconv_forward(x_nchw, weight, bias, *, tm=2048):
    """1x1 Conv2d (UNet outconv) forward pass.

    x_nchw : (N, C_in, H, W)                 float32
    weight : (C_out, C_in) or (C_out, C_in, 1, 1)
    bias   : (C_out,)
    returns (N, C_out, H, W)
    """
    N, C_in, H, W = x_nchw.shape
    if weight.ndim == 4:
        weight = weight.reshape(weight.shape[0], weight.shape[1])
    C_out = weight.shape[0]
    HW = H * W

    # Spatial tile: lane-dense (multiple of 128) unless one block covers the
    # whole extent; ragged tails are handled by the cdiv grid below.
    if HW <= tm:
        tm = HW
    else:
        tm = max(128, (tm // 128) * 128)
    grid = (N, pl.cdiv(HW, tm))

    x3 = x_nchw.reshape(N, C_in, HW)      # free reshape, no HBM traffic
    b2 = bias.reshape(C_out, 1)

    use_mxu = C_in >= 16                  # tiny channel counts -> VPU FMA path
    kernel = _make_outconv_kernel(C_in, C_out, use_mxu)

    cost = pl.CostEstimate(
        flops=2 * N * HW * C_in * C_out,
        transcendentals=0,
        bytes_accessed=4 * (N * C_in * HW + N * C_out * HW
                            + C_in * C_out + C_out),
    )

    out3 = pl.pallas_call(
        kernel,
        out_shape=jax.ShapeDtypeStruct((N, C_out, HW), x_nchw.dtype),
        grid_spec=pltpu.PrefetchScalarGridSpec(
            num_scalar_prefetch=0,
            grid=grid,
            in_specs=[
                pl.BlockSpec((1, C_in, tm), lambda n, j: (n, 0, j)),
                pl.BlockSpec((C_out, C_in), lambda n, j: (0, 0)),
                pl.BlockSpec((C_out, 1), lambda n, j: (0, 0)),
            ],
            out_specs=pl.BlockSpec((1, C_out, tm), lambda n, j: (n, 0, j)),
        ),
        compiler_params=pltpu.CompilerParams(
            dimension_semantics=("parallel", "parallel"),
            vmem_limit_bytes=32 * 1024 * 1024,
        ),
        cost_estimate=cost,
    )(x3, weight, b2)

    return out3.reshape(N, C_out, H, W)


def _outconv_ref(x, weight, bias):
    if weight.ndim == 4:
        weight = weight.reshape(weight.shape[0], weight.shape[1])
    return jnp.einsum("nchw,oc->nohw", x, weight) + bias[None, :, None, None]


if __name__ == "__main__":
    key = jax.random.PRNGKey(0)

    def run_case(case_key, N, C_in, C_out, H, W, tm=2048):
        kx, kw, kb = jax.random.split(case_key, 3)
        x = jax.random.normal(kx, (N, C_in, H, W), dtype=jnp.float32)
        # PyTorch Conv2d default init range: uniform(-1/sqrt(fan_in), +...)
        bound = 1.0 / float(C_in) ** 0.5
        w = jax.random.uniform(kw, (C_out, C_in), jnp.float32, -bound, bound)
        b = jax.random.uniform(kb, (C_out,), jnp.float32, -bound, bound)

        out = jax.block_until_ready(outconv_forward(x, w, b, tm=tm))
        ref = _outconv_ref(x, w, b)
        assert out.shape == (N, C_out, H, W)
        assert jnp.allclose(out, ref, atol=1e-5, rtol=1e-5), (
            f"mismatch for case N={N} C_in={C_in} C_out={C_out} H={H} W={W}")

    k1, k2, k3 = jax.random.split(key, 3)
    # Base case (module-scale shapes): exercises the VPU FMA path.
    run_case(k1, N=2, C_in=4, C_out=2, H=16, W=16)
    # Larger channel count: exercises the MXU matmul path.
    run_case(k2, N=1, C_in=64, C_out=2, H=16, W=16)
    # Ragged spatial extent vs tile: exercises the pl.cdiv grid / masked tail.
    run_case(k3, N=2, C_in=4, C_out=3, H=40, W=40, tm=512)

    print("KERNEL_OK")
</pallas_src>

<mosaic_0001>
module attributes {stable_mosaic.version = 11 : i64} {
  func.func @kernel(%arg0: i32, %arg1: i32, %arg2: memref<1x4x256xf32, #tpu.memory_space<vmem>>, %arg3: memref<2x4xf32, #tpu.memory_space<vmem>>, %arg4: memref<2x1xf32, #tpu.memory_space<vmem>>, %arg5: memref<1x2x256xf32, #tpu.memory_space<vmem>>) attributes {dimension_semantics = [#tpu.dimension_semantics<parallel>, #tpu.dimension_semantics<parallel>], iteration_bounds = array<i64: 2, 1>, scalar_prefetch = 0 : i64, scratch_operands = 0 : i64, tpu.core_type = #tpu.core_type<tc>, window_params = [{transform_indices = @transform_0, window_bounds = array<i64: 1, 4, 256>}, {pipeline_mode = #tpu.pipeline_mode<synchronous>, transform_indices = @transform_1, window_bounds = array<i64: 2, 4>}, {pipeline_mode = #tpu.pipeline_mode<synchronous>, transform_indices = @transform_2, window_bounds = array<i64: 2, 1>}, {transform_indices = @transform_3, window_bounds = array<i64: 1, 2, 256>}]} {
    %c0 = arith.constant 0 : index
    %c0_0 = arith.constant 0 : index
    %c0_1 = arith.constant 0 : index
    %0 = vector.load %arg2[%c0, %c0_0, %c0_1] : memref<1x4x256xf32, #tpu.memory_space<vmem>>, vector<1x4x256xf32>
    %1 = vector.shape_cast %0 : vector<1x4x256xf32> to vector<4x256xf32>
    %c0_2 = arith.constant 0 : index
    %c0_3 = arith.constant 0 : index
    %2 = vector.load %arg3[%c0_2, %c0_3] : memref<2x4xf32, #tpu.memory_space<vmem>>, vector<2x4xf32>
    %c0_4 = arith.constant 0 : index
    %c0_5 = arith.constant 0 : index
    %3 = vector.load %arg4[%c0_4, %c0_5] : memref<2x1xf32, #tpu.memory_space<vmem>>, vector<2x1xf32>
    %4 = vector.extract_strided_slice %2 {offsets = [0, 0], sizes = [2, 1], strides = [1, 1]} : vector<2x4xf32> to vector<2x1xf32>
    %5 = vector.extract_strided_slice %1 {offsets = [0, 0], sizes = [1, 256], strides = [1, 1]} : vector<4x256xf32> to vector<1x256xf32>
    %6 = vector.broadcast %4 : vector<2x1xf32> to vector<2x256xf32>
    %7 = vector.broadcast %5 : vector<1x256xf32> to vector<2x256xf32>
    %8 = arith.mulf %6, %7 : vector<2x256xf32>
    %9 = vector.extract_strided_slice %2 {offsets = [0, 1], sizes = [2, 1], strides = [1, 1]} : vector<2x4xf32> to vector<2x1xf32>
    %10 = vector.extract_strided_slice %1 {offsets = [1, 0], sizes = [1, 256], strides = [1, 1]} : vector<4x256xf32> to vector<1x256xf32>
    %11 = vector.broadcast %9 : vector<2x1xf32> to vector<2x256xf32>
    %12 = vector.broadcast %10 : vector<1x256xf32> to vector<2x256xf32>
    %13 = arith.mulf %11, %12 : vector<2x256xf32>
    %14 = arith.addf %8, %13 : vector<2x256xf32>
    %15 = vector.extract_strided_slice %2 {offsets = [0, 2], sizes = [2, 1], strides = [1, 1]} : vector<2x4xf32> to vector<2x1xf32>
    %16 = vector.extract_strided_slice %1 {offsets = [2, 0], sizes = [1, 256], strides = [1, 1]} : vector<4x256xf32> to vector<1x256xf32>
    %17 = vector.broadcast %15 : vector<2x1xf32> to vector<2x256xf32>
    %18 = vector.broadcast %16 : vector<1x256xf32> to vector<2x256xf32>
    %19 = arith.mulf %17, %18 : vector<2x256xf32>
    %20 = arith.addf %14, %19 : vector<2x256xf32>
    %21 = vector.extract_strided_slice %2 {offsets = [0, 3], sizes = [2, 1], strides = [1, 1]} : vector<2x4xf32> to vector<2x1xf32>
    %22 = vector.extract_strided_slice %1 {offsets = [3, 0], sizes = [1, 256], strides = [1, 1]} : vector<4x256xf32> to vector<1x256xf32>
    %23 = vector.broadcast %21 : vector<2x1xf32> to vector<2x256xf32>
    %24 = vector.broadcast %22 : vector<1x256xf32> to vector<2x256xf32>
    %25 = arith.mulf %23, %24 : vector<2x256xf32>
    %26 = arith.addf %20, %25 : vector<2x256xf32>
    %27 = vector.broadcast %3 : vector<2x1xf32> to vector<2x256xf32>
    %28 = arith.addf %26, %27 : vector<2x256xf32>
    %c0_6 = arith.constant 0 : index
    %c0_7 = arith.constant 0 : index
    %c0_8 = arith.constant 0 : index
    %29 = vector.load %arg5[%c0_6, %c0_7, %c0_8] : memref<1x2x256xf32, #tpu.memory_space<vmem>>, vector<1x2x256xf32>
    %30 = vector.shape_cast %29 : vector<1x2x256xf32> to vector<2x256xf32>
    %31 = vector.shape_cast %28 : vector<2x256xf32> to vector<1x2x256xf32>
    tpu.vector_store %arg5[%c0_6, %c0_7, %c0_8], %31 {strides = array<i32>} : memref<1x2x256xf32, #tpu.memory_space<vmem>>, vector<1x2x256xf32>,
    return
  }
  func.func @transform_0(%arg0: i32, %arg1: i32) -> (i32, i32, i32) {
    %c0_i32 = arith.constant 0 : i32
    %c0_i32_0 = arith.constant 0 : i32
    return %arg0, %c0_i32, %arg1 : i32, i32, i32
  }
  func.func @transform_1(%arg0: i32, %arg1: i32) -> (i32, i32) {
    %c0_i32 = arith.constant 0 : i32
    %c0_i32_0 = arith.constant 0 : i32
    %c0_i32_1 = arith.constant 0 : i32
    return %c0_i32, %c0_i32_0 : i32, i32
  }
  func.func @transform_2(%arg0: i32, %arg1: i32) -> (i32, i32) {
    %c0_i32 = arith.constant 0 : i32
    %c0_i32_0 = arith.constant 0 : i32
    %c0_i32_1 = arith.constant 0 : i32
    return %c0_i32, %c0_i32_0 : i32, i32
  }
  func.func @transform_3(%arg0: i32, %arg1: i32) -> (i32, i32, i32) {
    %c0_i32 = arith.constant 0 : i32
    %c0_i32_0 = arith.constant 0 : i32
    return %arg0, %c0_i32, %arg1 : i32, i32, i32
  }
}

</mosaic_0001>

<bundles_post_ra>
// kernel: tpu_custom_call.1
= control target key start
LH: loop header
LB: loop body
LE: loop exit
PB: predicated region body
PF: predicated region fallthrough
CT: control target
= control target key end

     0   :  { %8 = vsyncpa [#allocation3], 0  ;;  %s739_s0 = inlined_call_operand.hbm [shape: f32[2,4,256], index: 0, kind: input, shape index: {}]   ;;  %s740_s1 = inlined_call_operand.vmem [shape: f32[2,4], index: 1, kind: input, shape index: {}]   ;;  %s741_s2 = inlined_call_operand.vmem [shape: f32[2,1], index: 2, kind: input, shape index: {}]   ;;  %s742_s3 = inlined_call_operand.hbm [shape: f32[2,2,256], index: 3, kind: output, shape index: {}]  }
   0x1   :  { %10 = vsyncpa [#allocation3 + $0x1], 0 }
   0x2   :  { %11 = vsyncpa [#allocation4], 0 }
   0x3   :  { %13 = vsyncpa [#allocation4 + $0x1], 0  ;;  %s612_s12 = smov 0   ;;  %s614_s13 = smov 0  }
   0x4   :  { %s616_s14 = smov 0   ;;  %s618_s15 = smov 0  }
   0x5   :  { %s620_s16 = smov 0   ;;  %s622_s17 = smov 0  }
   0x6 LB: > { %s385_s18 = sadd.s32 4294967295, %s586_s17   ;;  %s386_s19 = sadd.s32 4294967294, %s586_s17   ;;  %s586_s17 = sphi %s622_s17, %s19_s17   ;;  %s582_s16 = sphi %s620_s16, %s751_s16   ;;  %s578_s15 = sphi %s618_s15, %s750_s15   ;;  %s574_s14 = sphi %s616_s14, %s749_s14   ;;  %s570_s13 = sphi %s614_s13, %s748_s13   ;;  %s566_s12 = sphi %s612_s12, %s747_s12  }
   0x7   : > { %s31_s20 = sadd.s32 1, %s582_s16  ;;  %s40_s21 = sadd.s32 1, %s574_s14 }
   0x8   : > { %p33_p0 = scmp.ge.s32.totalorder %s31_s20, 2  ;;  %p47_p1 = scmp.ne.s32.totalorder %s574_s14, %s570_s13 }
   0x9   : > { %p48_p2 = scmp.eq.s32.totalorder %s586_s17, 0  ;;  %p53_p3 = scmp.ne.s32.totalorder %s570_s13, %s566_s12 }
   0xa   : > { %s753_s20 = smov (%p33_p0, %s31_s20), 0  ;;  %p54_p5 = scmp.eq.s32.totalorder %s385_s18, 0 }
   0xb   : > { %p653_p4 = por %p48_p2, %p47_p1  ;;  %s35_s23 = ssub.s32 %s582_s16, %s753_s20 }
   0xc   : > { %p121_p6 = scmp.eq.s32.totalorder %s385_s18, 1  ;;  %p38_p7 = scmp.eq.s32.totalorder %s35_s23, 0 }
   0xd   : > { %p659_p8 = por %p54_p5, %p53_p3  ;;  %p127_p10 = scmp.eq.s32.totalorder %s386_s19, 1 }
   0xe   : > { %p663_p9 = por %p121_p6, %p47_p1  ;;  %p388_p12 = scmp.ge.s32.totalorder %s586_s17, 2 }
   0xf   : > { %s668_s26 = scalar_select %p38_p7, %s574_s14, %s40_s21  }
  0x10   : > { %p670_p11 = por %p127_p10, %p53_p3  ;;  %p414_p13 = scmp.lt.s32.totalorder %s586_s17, 2 }
  0x11   : > { %s153_s28 = sand.u32 1, %s574_s14   ;;  %s400_s30 = sshll.u32 %s582_s16, 3 }
  0x12   : > { %s389_s29 = sshll.u32 %s153_s28, 3  ;;  %s164_s6 = scalar_lea.hbm %s739_s0, %s400_s30 }
  0x13   : > { %s157_s7 = scalar_lea.vmem [#allocation2], %s389_s29  ;;  %s166_s9 = sshll.u32 %s164_s6, 4  ;;  %s167_s9 = int_to_ptr.hbm [resolvable:$true] %s166_s9 }
  0x14   : > { %s168_s8 = sshll.u32 %s157_s7, 4  ;;  %p407_p0 = pnand %p414_p13, %p653_p4  ;;  %s169_s8 = int_to_ptr.vmem [resolvable:$true] %s168_s8 }
  0x15   : > { %p392_p1 = scmp.ge.s32.totalorder %s586_s17, 1  ;;  %p173_p2 = scmp.lt.s32.totalorder %s586_s17, 3 }
  0x16   : > { %s154_s10 = scalar_lea.sflag [#allocation3], %s153_s28 }
  0x17   : > { %409 = dma.hbm_to_vmem [thread:$0]  (!%p407_p0), %s167_s9, 128, %s169_s8, %s154_s10  }
  0x18   : > { %p174_p3 = pnand %p392_p1, %p173_p2 }
  0x19   : > { %s686_s11 = sand.u32 (!%p174_p3), 1, %s570_s13  }
  0x1a   : > { %177 = sbr.rel (%p174_p3) target bundleno = 174 (0xae), region = 32  ;;  %s393_s18 = sshll.u32 (!%p174_p3), %s686_s11, 3 }
  0x1b   : > { %s180_s19 = scalar_lea.sflag (!%p174_p3), [#allocation3], %s686_s11  ;;  %s183_s21 = scalar_lea.vmem (!%p174_p3), [#allocation2], %s393_s18 }
  0x1f   : > { %557 = dma.done.wait (%p659_p8), %s180_s19, 128  }
  0x20   : > { %559 = vsyncadd (%p659_p8), %s180_s19, 4294967168  ;;  %v588_v0 = vmov 0   ;;  %v589_v1 = vmov 2   ;;  %v210_v2 = vld [vmem:[%s740_s1] sm:$0x3]  ;;  %v590_v4 = vmov 1  }
  0x21   : > { %468 = vset.pattern.permute.xlu0 %v588_v0  ;;  %470 = vset.pattern.permute.xlu1 %v589_v1  ;;  %v211_v3 = vld [vmem:[%s741_s2] sm:$0x3]  ;;  %v591_v5 = vmov 3   ;;  %s394_s24 = sshll.u32 %s686_s11, 2  ;;  %s401_s30 = sshll.u32 %s578_s15, 2  ;;  %vm278_vm0 = vcmask 1041408  }
  0x22   : > { %472 = vset.pattern.permute.xlu2 %v588_v0  ;;  %214 = vperm.xlu0 %468, %v210_v2   ;;  %v209_v6 = vld [vmem:[%s183_s21] sm:$0xff]  ;;  %s296_s6 = scalar_lea.hbm %s742_s3, %s401_s30  ;;  %s206_s7 = scalar_lea.vmem [#allocation5], %s394_s24 }
  0x23   : > { %241 = vperm.xlu1 %470, %v210_v2   ;;  %270 = vperm.xlu2 %472, %v211_v3   ;;  %v218_v9 = vperm.slane %v209_v6, 0  ;;  %v219_v10 = vperm.slane %v209_v6, 4  ;;  %v230_v11 = vperm.slane %v209_v6, 1  ;;  %v231_v12 = vperm.slane %v209_v6, 5  ;;  %s298_s8 = sshll.u32 %s206_s7, 4  ;;  %s300_s9 = sshll.u32 %s296_s6, 4  ;;  %s299_s8 = int_to_ptr.vmem [resolvable:$true] %s298_s8  ;;  %s301_s9 = int_to_ptr.hbm [resolvable:$true] %s300_s9 }
  0x24   : > { %v244_v13 = vperm.slane %v209_v6, 2  ;;  %v245_v14 = vperm.slane %v209_v6, 6  ;;  %v258_v15 = vperm.slane %v209_v6, 3  ;;  %v259_v16 = vperm.slane %v209_v6, 7  ;;  %s283_s15 = scalar_lea.sflag [#allocation4], %s686_s11  ;;  %s518_s10 = sshra.s32 %s301_s9, 4  ;;  %s519_s10 = int_to_ptr.hbm [resolvable:$true] %s518_s10 }
  0x25   : > { %v222_v17 = vperm.slane %v218_v9, 0  ;;  %v223_v18 = vperm.slane %v219_v10, 0  ;;  %v234_v19 = vperm.slane %v230_v11, 1  ;;  %v235_v20 = vperm.slane %v231_v12, 1  ;;  %s520_s18 = scalar_lea.hbm %s519_s10, 4  ;;  %s524_s22 = scalar_lea.hbm %s742_s3, 8 }
  0x26   : > { %v248_v21 = vperm.slane %v244_v13, 2  ;;  %v249_v22 = vperm.slane %v245_v14, 2  ;;  %v262_v23 = vperm.slane %v258_v15, 3  ;;  %v263_v24 = vperm.slane %v259_v16, 3  ;;  %p521_p4 = scmp.ne.s32.totalorder %s519_s10, %s520_s18  ;;  %p525_p7 = scmp.lt.s32.totalorder %s519_s10, %s742_s3 }
  0x27   : > { %p526_p8 = scmp.lt.s32.totalorder %s524_s22, %s520_s18 }
  0x28   : > { %p522_p5 = pnand %p521_p4, %p663_p9 }
  0x29   : > { %p527_p10 = por %p526_p8, %p525_p7 }
  0x2a   : > { %469 = vset.pattern.permute.xlu0 %v590_v4  ;;  %p523_p6 = pneg %p522_p5 }
  0x2b   : > { %471 = vset.pattern.permute.xlu1 %v591_v5  ;;  %227 = vperm.xlu0 %469, %v210_v2  }
  0x2c   : > { %255 = vperm.xlu1 %471, %v210_v2   ;;  %p528_p13 = pnand %p527_p10, %p523_p6 }
  0x33   : > { %473 = vset.pattern.permute.xlu0 %v588_v0 }
  0x7d   : > { %v271_v39 = vpop.permute.xlu2 %270 }
  0x94   : > { %v215_v7 = vpop.permute.xlu0 %214 }
  0x95   : > { %v242_v8 = vpop.permute.xlu1 %241  ;;  %v224_v27 = vmul.f32 %v222_v17, %v215_v7  ;;  %v225_v28 = vmul.f32 %v223_v18, %v215_v7 }
  0x96   : > { %v250_v31 = vmul.f32 %v248_v21, %v242_v8  ;;  %v251_v32 = vmul.f32 %v249_v22, %v242_v8 }
  0x9d   : > { %v228_v25 = vpop.permute.xlu0 %227 }
  0x9e   : > { %v256_v26 = vpop.permute.xlu1 %255  ;;  %v236_v29 = vmul.f32 %v234_v19, %v228_v25  ;;  %v237_v30 = vmul.f32 %v235_v20, %v228_v25 }
  0x9f   : > { %v264_v35 = vmul.f32 %v262_v23, %v256_v26  ;;  %v265_v36 = vmul.f32 %v263_v24, %v256_v26 }
  0xa0   : > { %v238_v33 = vadd.f32 %v236_v29, %v224_v27  ;;  %v239_v34 = vadd.f32 %v237_v30, %v225_v28 }
  0xa2   : > { %v252_v37 = vadd.f32 %v250_v31, %v238_v33  ;;  %v253_v38 = vadd.f32 %v251_v32, %v239_v34 }
  0xa4   : > { %v266_v40 = vadd.f32 %v264_v35, %v252_v37  ;;  %v267_v41 = vadd.f32 %v265_v36, %v253_v38 }
  0xa6   : > { %v274_v42 = vadd.f32 %v271_v39, %v267_v41  ;;  %v273_v43 = vadd.f32 %v271_v39, %v266_v40 }
  0xa8   : > { %v277_v44 = vrot.slane %v274_v42, 6 }
  0xaa   : > { %v279_v45 = vsel %vm278_vm0, %v273_v43, %v277_v44 }
  0xab   : > { %281 = vst [vmem:[%s206_s7] sm:$0xf] %v279_v45 }
  0xac   : > { %531 = shalt.err (!%p528_p13)
}
  0xad   : > { %404 = dma.vmem_to_hbm [thread:$0]  (%p663_p9), %s299_s8, 64, %s301_s9, %s283_s15  }
  0xae PF: > { %s312_s11 = sand.u32 1, %s566_s12   ;;  %p411_p0 = pnand %p388_p12, %p670_p11 }
  0xaf   : > { %s313_s29 = scalar_lea.sflag [#allocation4], %s312_s11 }
  0xb0   : > { %p412_p1 = pneg %p411_p0 }
  0xb2   : > { %561 = dma.done.wait (%p412_p1), %s313_s29, 64  }
  0xb3   : > { %563 = vsyncadd (%p412_p1), %s313_s29, 4294967232  ;;  %s19_s17 = sadd.s32 1, %s586_s17   ;;  %s747_s12 = smov %s570_s13 }
  0xb4   : > { %p16_p2 = scmp.ge.s32.totalorder %s19_s17, 4   ;;  %s748_s13 = smov %s574_s14 }
  0xb5   : > { %s749_s14 = smov %s668_s26  ;;  %s750_s15 = smov %s582_s16 }
  0xb6   : > { %s751_s16 = smov %s753_s20  ;;  %18 = sbr.rel (!%p16_p2) target bundleno = 6 (0x6), region = 77 }
  0xbb   :  { %319 = vsyncpa [#allocation3], 1 }
  0xbc   :  { %321 = vsyncpa [#allocation3 + $0x1], 1 }
  0xbd   :  { %322 = vsyncpa [#allocation4], 1 }
  0xbe   :  { %324 = vsyncpa [#allocation4 + $0x1], 1 }

</bundles_post_ra>
